<compile_context>
chip_gen: v5e
topology: v5e:2x2
jax: 0.10.0
libtpu: 0.0.40
codegen_flags: <defaults>
</compile_context>

<pallas_src>
import jax
import jax.numpy as jnp
from jax.experimental import pallas as pl
from jax.experimental.pallas import tpu as pltpu

# ------------------------- model hyper-parameters ---------------------------
VOCAB = 64       # input_size
HID = 32         # hidden_size
EMB = 32         # embedding_size
N_LAYERS = 1
SEQ = 8
BATCH = 4


# ------------------------------ Pallas kernel -------------------------------
def textrnn_kernel(ids_ref, emb_ref, wih_ref, whh_ref, bias_ref,
                   hc0_ref, wfc_ref, bfc_ref,
                   logits_ref, hc_out_ref,
                   gx_sc, hs_sc):
    """Fused embedding + input projection + LSTM recurrence + fc.

    ids_ref    : (S*Bp, 1)  int32 token ids (row index = t*Bp + b)
    emb_ref    : (V, E)     embedding table
    wih_ref    : (E, 4H)    packed W_ih^T, gate order [i, f, g, o]
    whh_ref    : (H, 4H)    packed W_hh^T, gate order [i, f, g, o]
    bias_ref   : (1, 4H)    b_ih + b_hh
    hc0_ref    : (2, Bp, H) initial (h0, c0)
    wfc_ref    : (H, V)     W_fc^T
    bfc_ref    : (1, V)     b_fc
    logits_ref : (S*Bp, V)  fc(out), lane-contiguous slab
    hc_out_ref : (2, Bp, H) final (h, c)
    gx_sc      : (S*Bp, 4H) VMEM scratch: precomputed input-gate projections
    hs_sc      : (S*Bp, H)  VMEM scratch: collected h_t for the batched fc
    """
    SB = gx_sc.shape[0]
    H = hs_sc.shape[-1]
    Bp = hc0_ref.shape[-2]
    S = SB // Bp
    V = emb_ref.shape[0]

    # --- embedding lookup (one-hot matmul) + input projection, all timesteps
    # NOTE: out-of-range ids produce a zero embedding row here; PyTorch's
    # nn.Embedding would raise instead.
    ids = ids_ref[...]                                              # (SB, 1)
    lane_ids = jax.lax.broadcasted_iota(jnp.int32, (SB, V), 1)
    onehot = (lane_ids == ids).astype(jnp.float32)                  # (SB, V)
    x_emb = jnp.dot(onehot, emb_ref[...],
                    preferred_element_type=jnp.float32)             # (SB, E)
    gx_sc[...] = (jnp.dot(x_emb, wih_ref[...],
                          preferred_element_type=jnp.float32)
                  + bias_ref[...])                                  # (SB, 4H)

    # Packed recurrent weights, cast to bf16 once, resident for the whole loop.
    whh_bf = whh_ref[...].astype(jnp.bfloat16)                      # (H, 4H)

    def step(t, carry):
        h, c = carry                                                # (Bp, H) f32
        row = pl.multiple_of(t * Bp, Bp)
        # One fused 128-lane recurrent matmul per step (bf16 ops, f32 accum).
        pre = gx_sc[pl.ds(row, Bp), :] + jnp.dot(
            h.astype(jnp.bfloat16), whh_bf,
            preferred_element_type=jnp.float32)                     # (Bp, 4H)
        # One full-width sigmoid (i, f, o live at lane offsets 0/32/96) plus a
        # single quarter-width tanh for g; elementwise math stays f32.
        sig = jax.nn.sigmoid(pre)
        i_g = sig[:, 0 * H:1 * H]
        f_g = sig[:, 1 * H:2 * H]
        o_g = sig[:, 3 * H:4 * H]
        g_g = jnp.tanh(pre[:, 2 * H:3 * H])
        c_new = f_g * c + i_g * g_g
        h_new = o_g * jnp.tanh(c_new)
        hs_sc[pl.ds(row, Bp), :] = h_new
        return (h_new, c_new)

    h_fin, c_fin = jax.lax.fori_loop(
        0, S, step, (hc0_ref[0], hc0_ref[1]), unroll=True)

    # Final-state writes happen exactly once, after the loop.
    hc_out_ref[0] = h_fin
    hc_out_ref[1] = c_fin

    # TODO(synk): nn.Dropout(0.2) is identity in eval mode; training-mode
    # dropout would use pltpu.prng_seed / pltpu.prng_random_bits on hs here.

    # fc hoisted out of the recurrence: one (S*Bp, H) @ (H, V) matmul + bias,
    # written as a single slab (reshape to (S, B, V) happens in the wrapper).
    logits_ref[...] = (jnp.dot(hs_sc[...], wfc_ref[...],
                               preferred_element_type=jnp.float32)
                       + bfc_ref[...])


# --------------------------------- wrapper -----------------------------------
def textrnn_forward(x_idx, hidden, params):
    """x_idx: (S, B, 1) int32 token ids; hidden: (h0, c0), each (1, B, H)."""
    emb_w, w_ih, w_hh, b_ih, b_hh, w_fc, b_fc = params
    h0, c0 = hidden

    S, B, _ = x_idx.shape
    H = w_hh.shape[1]
    V = w_fc.shape[0]

    # Pad batch up to a multiple of 8 sublanes; padded rows are discarded later.
    Bp = max(8, -(-B // 8) * 8)
    pad = Bp - B

    ids = jnp.pad(x_idx[..., 0], ((0, 0), (0, pad)))            # (S, Bp)
    ids = ids.reshape(S * Bp, 1).astype(jnp.int32)              # (S*Bp, 1)

    hc0 = jnp.concatenate([h0, c0], axis=0)                     # (2, B, H)
    hc0 = jnp.pad(hc0, ((0, 0), (0, pad), (0, 0)))              # (2, Bp, H)

    wih_t = w_ih.T                                              # (E, 4H)
    whh_t = w_hh.T                                              # (H, 4H)
    bias = (b_ih + b_hh).reshape(1, 4 * H)                      # (1, 4H)
    wfc_t = w_fc.T                                              # (H, V)
    bfc = b_fc.reshape(1, V)                                    # (1, V)

    vmem = pl.BlockSpec(memory_space=pltpu.MemorySpace.VMEM)
    logits_p, hc_p = pl.pallas_call(
        textrnn_kernel,
        out_shape=(
            jax.ShapeDtypeStruct((S * Bp, V), jnp.float32),
            jax.ShapeDtypeStruct((2, Bp, H), jnp.float32),
        ),
        in_specs=[vmem] * 8,
        out_specs=(vmem, vmem),
        scratch_shapes=[pltpu.VMEM((S * Bp, 4 * H), jnp.float32),
                        pltpu.VMEM((S * Bp, H), jnp.float32)],
    )(ids, emb_w, wih_t, whh_t, bias, hc0, wfc_t, bfc)

    logits = logits_p.reshape(S, Bp, V)[:, :B, :]
    ht = hc_p[0:1, :B, :]
    ct = hc_p[1:2, :B, :]
    return logits, (ht, ct)


# ------------------------- deterministic parameter init ---------------------
def init_params(key):
    ks = jax.random.split(key, 7)
    scale = 0.1
    emb_w = scale * jax.random.normal(ks[0], (VOCAB, EMB), jnp.float32)
    w_ih = scale * jax.random.normal(ks[1], (4 * HID, EMB), jnp.float32)
    w_hh = scale * jax.random.normal(ks[2], (4 * HID, HID), jnp.float32)
    b_ih = scale * jax.random.normal(ks[3], (4 * HID,), jnp.float32)
    b_hh = scale * jax.random.normal(ks[4], (4 * HID,), jnp.float32)
    w_fc = scale * jax.random.normal(ks[5], (VOCAB, HID), jnp.float32)
    b_fc = scale * jax.random.normal(ks[6], (VOCAB,), jnp.float32)
    return emb_w, w_ih, w_hh, b_ih, b_hh, w_fc, b_fc


def init_hidden(batch_size=1):
    return (jnp.zeros((N_LAYERS, batch_size, HID), jnp.float32),
            jnp.zeros((N_LAYERS, batch_size, HID), jnp.float32))


# ------------------------------------ main -----------------------------------
if __name__ == "__main__":
    key = jax.random.PRNGKey(0)
    pkey, xkey = jax.random.split(key)
    params = init_params(pkey)

    x = jax.random.randint(xkey, (SEQ, BATCH, 1), 0, VOCAB, dtype=jnp.int32)
    hidden = init_hidden(BATCH)

    fwd = jax.jit(textrnn_forward)
    logits, (ht, ct) = fwd(x, hidden, params)
    jax.block_until_ready((logits, ht, ct))

    assert logits.shape == (SEQ, BATCH, VOCAB)
    assert ht.shape == (N_LAYERS, BATCH, HID)
    assert ct.shape == (N_LAYERS, BATCH, HID)
    print("KERNEL_OK")
</pallas_src>

<mosaic_0001>
module attributes {stable_mosaic.version = 11 : i64} {
  func.func @textrnn_kernel(%arg0: memref<64x1xi32, #tpu.memory_space<vmem>>, %arg1: memref<64x32xf32, #tpu.memory_space<vmem>>, %arg2: memref<32x128xf32, #tpu.memory_space<vmem>>, %arg3: memref<32x128xf32, #tpu.memory_space<vmem>>, %arg4: memref<1x128xf32, #tpu.memory_space<vmem>>, %arg5: memref<2x8x32xf32, #tpu.memory_space<vmem>>, %arg6: memref<32x64xf32, #tpu.memory_space<vmem>>, %arg7: memref<1x64xf32, #tpu.memory_space<vmem>>, %arg8: memref<64x64xf32, #tpu.memory_space<vmem>>, %arg9: memref<2x8x32xf32, #tpu.memory_space<vmem>>, %arg10: memref<64x128xf32, #tpu.memory_space<vmem>>, %arg11: memref<64x32xf32, #tpu.memory_space<vmem>>) attributes {dimension_semantics = [], scalar_prefetch = 0 : i64, scratch_operands = 2 : i64, tpu.core_type = #tpu.core_type<tc>} {
    %c0 = arith.constant 0 : index
    %c0_0 = arith.constant 0 : index
    %0 = vector.load %arg0[%c0, %c0_0] : memref<64x1xi32, #tpu.memory_space<vmem>>, vector<64x1xi32>
    %1 = tpu.iota {dimensions = array<i32: 1>} : vector<64x64xi32>
    %2 = vector.broadcast %0 : vector<64x1xi32> to vector<64x64xi32>
    %3 = arith.cmpi eq, %1, %2 : vector<64x64xi32>
    %4 = arith.extui %3 : vector<64x64xi1> to vector<64x64xi32>
    %5 = arith.sitofp %4 : vector<64x64xi32> to vector<64x64xf32>
    %c0_1 = arith.constant 0 : index
    %c0_2 = arith.constant 0 : index
    %6 = vector.load %arg1[%c0_1, %c0_2] : memref<64x32xf32, #tpu.memory_space<vmem>>, vector<64x32xf32>
    %cst = arith.constant dense<0.000000e+00> : vector<64x32xf32>
    %7 = tpu.matmul %5, %6, %cst {dimension_numbers = #tpu.dot_dimension_numbers<[1], [0], [0], [1], [0, 0, 1, 1], [], []>} : vector<64x64xf32>, vector<64x32xf32>, vector<64x32xf32> -> vector<64x32xf32>
    %c0_3 = arith.constant 0 : index
    %c0_4 = arith.constant 0 : index
    %8 = vector.load %arg2[%c0_3, %c0_4] : memref<32x128xf32, #tpu.memory_space<vmem>>, vector<32x128xf32>
    %cst_5 = arith.constant dense<0.000000e+00> : vector<64x128xf32>
    %9 = tpu.matmul %7, %8, %cst_5 {dimension_numbers = #tpu.dot_dimension_numbers<[1], [0], [0], [1], [0, 0, 1, 1], [], []>} : vector<64x32xf32>, vector<32x128xf32>, vector<64x128xf32> -> vector<64x128xf32>
    %c0_6 = arith.constant 0 : index
    %c0_7 = arith.constant 0 : index
    %10 = vector.load %arg4[%c0_6, %c0_7] : memref<1x128xf32, #tpu.memory_space<vmem>>, vector<1x128xf32>
    %11 = vector.broadcast %10 : vector<1x128xf32> to vector<64x128xf32>
    %12 = arith.addf %9, %11 : vector<64x128xf32>
    %c0_8 = arith.constant 0 : index
    %c0_9 = arith.constant 0 : index
    %13 = vector.load %arg10[%c0_8, %c0_9] : memref<64x128xf32, #tpu.memory_space<vmem>>, vector<64x128xf32>
    tpu.vector_store %arg10[%c0_8, %c0_9], %12 {strides = array<i32>} : memref<64x128xf32, #tpu.memory_space<vmem>>, vector<64x128xf32>,
    %c0_10 = arith.constant 0 : index
    %c0_11 = arith.constant 0 : index
    %14 = vector.load %arg3[%c0_10, %c0_11] : memref<32x128xf32, #tpu.memory_space<vmem>>, vector<32x128xf32>
    %15 = arith.truncf %14 : vector<32x128xf32> to vector<32x128xbf16>
    %c0_12 = arith.constant 0 : index
    %c0_13 = arith.constant 0 : index
    %c0_14 = arith.constant 0 : index
    %16 = vector.load %arg5[%c0_12, %c0_13, %c0_14] : memref<2x8x32xf32, #tpu.memory_space<vmem>>, vector<1x8x32xf32>
    %17 = vector.shape_cast %16 : vector<1x8x32xf32> to vector<8x32xf32>
    %c1 = arith.constant 1 : index
    %c0_15 = arith.constant 0 : index
    %c0_16 = arith.constant 0 : index
    %18 = vector.load %arg5[%c1, %c0_15, %c0_16] : memref<2x8x32xf32, #tpu.memory_space<vmem>>, vector<1x8x32xf32>
    %19 = vector.shape_cast %18 : vector<1x8x32xf32> to vector<8x32xf32>
    %c0_i32 = arith.constant 0 : i32
    %c8_i32 = arith.constant 8 : i32
    %20 = arith.muli %c0_i32, %c8_i32 : i32
    %21 = tpu.assume_multiple %20, 8 : i32
    %22 = arith.index_cast %21 : i32 to index
    %c0_17 = arith.constant 0 : index
    %23 = vector.load %arg10[%22, %c0_17] : memref<64x128xf32, #tpu.memory_space<vmem>>, vector<8x128xf32>
    %24 = arith.truncf %17 : vector<8x32xf32> to vector<8x32xbf16>
    %cst_18 = arith.constant dense<0.000000e+00> : vector<8x128xf32>
    %25 = tpu.matmul %24, %15, %cst_18 {dimension_numbers = #tpu.dot_dimension_numbers<[1], [0], [0], [1], [0, 0, 1, 1], [], []>} : vector<8x32xbf16>, vector<32x128xbf16>, vector<8x128xf32> -> vector<8x128xf32>
    %26 = arith.addf %23, %25 : vector<8x128xf32>
    %27 = arith.negf %26 : vector<8x128xf32>
    %28 = math.exp %27 : vector<8x128xf32>
    %cst_19 = arith.constant 1.000000e+00 : f32
    %29 = vector.broadcast %cst_19 : f32 to vector<8x128xf32>
    %30 = arith.addf %29, %28 : vector<8x128xf32>
    %31 = arith.divf %29, %30 : vector<8x128xf32>
    %32 = vector.extract_strided_slice %31 {offsets = [0, 0], sizes = [8, 32], strides = [1, 1]} : vector<8x128xf32> to vector<8x32xf32>
    %33 = vector.extract_strided_slice %31 {offsets = [0, 32], sizes = [8, 32], strides = [1, 1]} : vector<8x128xf32> to vector<8x32xf32>
    %34 = vector.extract_strided_slice %31 {offsets = [0, 96], sizes = [8, 32], strides = [1, 1]} : vector<8x128xf32> to vector<8x32xf32>
    %35 = vector.extract_strided_slice %26 {offsets = [0, 64], sizes = [8, 32], strides = [1, 1]} : vector<8x128xf32> to vector<8x32xf32>
    %36 = math.tanh %35 : vector<8x32xf32>
    %37 = arith.mulf %33, %19 : vector<8x32xf32>
    %38 = arith.mulf %32, %36 : vector<8x32xf32>
    %39 = arith.addf %37, %38 : vector<8x32xf32>
    %40 = math.tanh %39 : vector<8x32xf32>
    %41 = arith.mulf %34, %40 : vector<8x32xf32>
    %42 = arith.index_cast %21 : i32 to index
    %c0_20 = arith.constant 0 : index
    %43 = vector.load %arg11[%42, %c0_20] : memref<64x32xf32, #tpu.memory_space<vmem>>, vector<8x32xf32>
    tpu.vector_store %arg11[%42, %c0_20], %41 {strides = array<i32>} : memref<64x32xf32, #tpu.memory_space<vmem>>, vector<8x32xf32>,
    %c1_i32 = arith.constant 1 : i32
    %c8_i32_21 = arith.constant 8 : i32
    %44 = arith.muli %c1_i32, %c8_i32_21 : i32
    %45 = tpu.assume_multiple %44, 8 : i32
    %46 = arith.index_cast %45 : i32 to index
    %c0_22 = arith.constant 0 : index
    %47 = vector.load %arg10[%46, %c0_22] : memref<64x128xf32, #tpu.memory_space<vmem>>, vector<8x128xf32>
    %48 = arith.truncf %41 : vector<8x32xf32> to vector<8x32xbf16>
    %cst_23 = arith.constant dense<0.000000e+00> : vector<8x128xf32>
    %49 = tpu.matmul %48, %15, %cst_23 {dimension_numbers = #tpu.dot_dimension_numbers<[1], [0], [0], [1], [0, 0, 1, 1], [], []>} : vector<8x32xbf16>, vector<32x128xbf16>, vector<8x128xf32> -> vector<8x128xf32>
    %50 = arith.addf %47, %49 : vector<8x128xf32>
    %51 = arith.negf %50 : vector<8x128xf32>
    %52 = math.exp %51 : vector<8x128xf32>
    %cst_24 = arith.constant 1.000000e+00 : f32
    %53 = vector.broadcast %cst_24 : f32 to vector<8x128xf32>
    %54 = arith.addf %53, %52 : vector<8x128xf32>
    %55 = arith.divf %53, %54 : vector<8x128xf32>
    %56 = vector.extract_strided_slice %55 {offsets = [0, 0], sizes = [8, 32], strides = [1, 1]} : vector<8x128xf32> to vector<8x32xf32>
    %57 = vector.extract_strided_slice %55 {offsets = [0, 32], sizes = [8, 32], strides = [1, 1]} : vector<8x128xf32> to vector<8x32xf32>
    %58 = vector.extract_strided_slice %55 {offsets = [0, 96], sizes = [8, 32], strides = [1, 1]} : vector<8x128xf32> to vector<8x32xf32>
    %59 = vector.extract_strided_slice %50 {offsets = [0, 64], sizes = [8, 32], strides = [1, 1]} : vector<8x128xf32> to vector<8x32xf32>
    %60 = math.tanh %59 : vector<8x32xf32>
    %61 = arith.mulf %57, %39 : vector<8x32xf32>
    %62 = arith.mulf %56, %60 : vector<8x32xf32>
    %63 = arith.addf %61, %62 : vector<8x32xf32>
    %64 = math.tanh %63 : vector<8x32xf32>
    %65 = arith.mulf %58, %64 : vector<8x32xf32>
    %66 = arith.index_cast %45 : i32 to index
    %c0_25 = arith.constant 0 : index
    %67 = vector.load %arg11[%66, %c0_25] : memref<64x32xf32, #tpu.memory_space<vmem>>, vector<8x32xf32>
    tpu.vector_store %arg11[%66, %c0_25], %65 {strides = array<i32>} : memref<64x32xf32, #tpu.memory_space<vmem>>, vector<8x32xf32>,
    %c2_i32 = arith.constant 2 : i32
    %c8_i32_26 = arith.constant 8 : i32
    %68 = arith.muli %c2_i32, %c8_i32_26 : i32
    %69 = tpu.assume_multiple %68, 8 : i32
    %70 = arith.index_cast %69 : i32 to index
    %c0_27 = arith.constant 0 : index
    %71 = vector.load %arg10[%70, %c0_27] : memref<64x128xf32, #tpu.memory_space<vmem>>, vector<8x128xf32>
    %72 = arith.truncf %65 : vector<8x32xf32> to vector<8x32xbf16>
    %cst_28 = arith.constant dense<0.000000e+00> : vector<8x128xf32>
    %73 = tpu.matmul %72, %15, %cst_28 {dimension_numbers = #tpu.dot_dimension_numbers<[1], [0], [0], [1], [0, 0, 1, 1], [], []>} : vector<8x32xbf16>, vector<32x128xbf16>, vector<8x128xf32> -> vector<8x128xf32>
    %74 = arith.addf %71, %73 : vector<8x128xf32>
    %75 = arith.negf %74 : vector<8x128xf32>
    %76 = math.exp %75 : vector<8x128xf32>
    %cst_29 = arith.constant 1.000000e+00 : f32
    %77 = vector.broadcast %cst_29 : f32 to vector<8x128xf32>
    %78 = arith.addf %77, %76 : vector<8x128xf32>
    %79 = arith.divf %77, %78 : vector<8x128xf32>
    %80 = vector.extract_strided_slice %79 {offsets = [0, 0], sizes = [8, 32], strides = [1, 1]} : vector<8x128xf32> to vector<8x32xf32>
    %81 = vector.extract_strided_slice %79 {offsets = [0, 32], sizes = [8, 32], strides = [1, 1]} : vector<8x128xf32> to vector<8x32xf32>
    %82 = vector.extract_strided_slice %79 {offsets = [0, 96], sizes = [8, 32], strides = [1, 1]} : vector<8x128xf32> to vector<8x32xf32>
    %83 = vector.extract_strided_slice %74 {offsets = [0, 64], sizes = [8, 32], strides = [1, 1]} : vector<8x128xf32> to vector<8x32xf32>
    %84 = math.tanh %83 : vector<8x32xf32>
    %85 = arith.mulf %81, %63 : vector<8x32xf32>
    %86 = arith.mulf %80, %84 : vector<8x32xf32>
    %87 = arith.addf %85, %86 : vector<8x32xf32>
    %88 = math.tanh %87 : vector<8x32xf32>
    %89 = arith.mulf %82, %88 : vector<8x32xf32>
    %90 = arith.index_cast %69 : i32 to index
    %c0_30 = arith.constant 0 : index
    %91 = vector.load %arg11[%90, %c0_30] : memref<64x32xf32, #tpu.memory_space<vmem>>, vector<8x32xf32>
    tpu.vector_store %arg11[%90, %c0_30], %89 {strides = array<i32>} : memref<64x32xf32, #tpu.memory_space<vmem>>, vector<8x32xf32>,
    %c3_i32 = arith.constant 3 : i32
    %c8_i32_31 = arith.constant 8 : i32
    %92 = arith.muli %c3_i32, %c8_i32_31 : i32
    %93 = tpu.assume_multiple %92, 8 : i32
    %94 = arith.index_cast %93 : i32 to index
    %c0_32 = arith.constant 0 : index
    %95 = vector.load %arg10[%94, %c0_32] : memref<64x128xf32, #tpu.memory_space<vmem>>, vector<8x128xf32>
    %96 = arith.truncf %89 : vector<8x32xf32> to vector<8x32xbf16>
    %cst_33 = arith.constant dense<0.000000e+00> : vector<8x128xf32>
    %97 = tpu.matmul %96, %15, %cst_33 {dimension_numbers = #tpu.dot_dimension_numbers<[1], [0], [0], [1], [0, 0, 1, 1], [], []>} : vector<8x32xbf16>, vector<32x128xbf16>, vector<8x128xf32> -> vector<8x128xf32>
    %98 = arith.addf %95, %97 : vector<8x128xf32>
    %99 = arith.negf %98 : vector<8x128xf32>
    %100 = math.exp %99 : vector<8x128xf32>
    %cst_34 = arith.constant 1.000000e+00 : f32
    %101 = vector.broadcast %cst_34 : f32 to vector<8x128xf32>
    %102 = arith.addf %101, %100 : vector<8x128xf32>
    %103 = arith.divf %101, %102 : vector<8x128xf32>
    %104 = vector.extract_strided_slice %103 {offsets = [0, 0], sizes = [8, 32], strides = [1, 1]} : vector<8x128xf32> to vector<8x32xf32>
    %105 = vector.extract_strided_slice %103 {offsets = [0, 32], sizes = [8, 32], strides = [1, 1]} : vector<8x128xf32> to vector<8x32xf32>
    %106 = vector.extract_strided_slice %103 {offsets = [0, 96], sizes = [8, 32], strides = [1, 1]} : vector<8x128xf32> to vector<8x32xf32>
    %107 = vector.extract_strided_slice %98 {offsets = [0, 64], sizes = [8, 32], strides = [1, 1]} : vector<8x128xf32> to vector<8x32xf32>
    %108 = math.tanh %107 : vector<8x32xf32>
    %109 = arith.mulf %105, %87 : vector<8x32xf32>
    %110 = arith.mulf %104, %108 : vector<8x32xf32>
    %111 = arith.addf %109, %110 : vector<8x32xf32>
    %112 = math.tanh %111 : vector<8x32xf32>
    %113 = arith.mulf %106, %112 : vector<8x32xf32>
    %114 = arith.index_cast %93 : i32 to index
    %c0_35 = arith.constant 0 : index
    %115 = vector.load %arg11[%114, %c0_35] : memref<64x32xf32, #tpu.memory_space<vmem>>, vector<8x32xf32>
    tpu.vector_store %arg11[%114, %c0_35], %113 {strides = array<i32>} : memref<64x32xf32, #tpu.memory_space<vmem>>, vector<8x32xf32>,
    %c4_i32 = arith.constant 4 : i32
    %c8_i32_36 = arith.constant 8 : i32
    %116 = arith.muli %c4_i32, %c8_i32_36 : i32
    %117 = tpu.assume_multiple %116, 8 : i32
    %118 = arith.index_cast %117 : i32 to index
    %c0_37 = arith.constant 0 : index
    %119 = vector.load %arg10[%118, %c0_37] : memref<64x128xf32, #tpu.memory_space<vmem>>, vector<8x128xf32>
    %120 = arith.truncf %113 : vector<8x32xf32> to vector<8x32xbf16>
    %cst_38 = arith.constant dense<0.000000e+00> : vector<8x128xf32>
    %121 = tpu.matmul %120, %15, %cst_38 {dimension_numbers = #tpu.dot_dimension_numbers<[1], [0], [0], [1], [0, 0, 1, 1], [], []>} : vector<8x32xbf16>, vector<32x128xbf16>, vector<8x128xf32> -> vector<8x128xf32>
    %122 = arith.addf %119, %121 : vector<8x128xf32>
    %123 = arith.negf %122 : vector<8x128xf32>
    %124 = math.exp %123 : vector<8x128xf32>
    %cst_39 = arith.constant 1.000000e+00 : f32
    %125 = vector.broadcast %cst_39 : f32 to vector<8x128xf32>
    %126 = arith.addf %125, %124 : vector<8x128xf32>
    %127 = arith.divf %125, %126 : vector<8x128xf32>
    %128 = vector.extract_strided_slice %127 {offsets = [0, 0], sizes = [8, 32], strides = [1, 1]} : vector<8x128xf32> to vector<8x32xf32>
    %129 = vector.extract_strided_slice %127 {offsets = [0, 32], sizes = [8, 32], strides = [1, 1]} : vector<8x128xf32> to vector<8x32xf32>
    %130 = vector.extract_strided_slice %127 {offsets = [0, 96], sizes = [8, 32], strides = [1, 1]} : vector<8x128xf32> to vector<8x32xf32>
    %131 = vector.extract_strided_slice %122 {offsets = [0, 64], sizes = [8, 32], strides = [1, 1]} : vector<8x128xf32> to vector<8x32xf32>
    %132 = math.tanh %131 : vector<8x32xf32>
    %133 = arith.mulf %129, %111 : vector<8x32xf32>
    %134 = arith.mulf %128, %132 : vector<8x32xf32>
    %135 = arith.addf %133, %134 : vector<8x32xf32>
    %136 = math.tanh %135 : vector<8x32xf32>
    %137 = arith.mulf %130, %136 : vector<8x32xf32>
    %138 = arith.index_cast %117 : i32 to index
    %c0_40 = arith.constant 0 : index
    %139 = vector.load %arg11[%138, %c0_40] : memref<64x32xf32, #tpu.memory_space<vmem>>, vector<8x32xf32>
    tpu.vector_store %arg11[%138, %c0_40], %137 {strides = array<i32>} : memref<64x32xf32, #tpu.memory_space<vmem>>, vector<8x32xf32>,
    %c5_i32 = arith.constant 5 : i32
    %c8_i32_41 = arith.constant 8 : i32
    %140 = arith.muli %c5_i32, %c8_i32_41 : i32
    %141 = tpu.assume_multiple %140, 8 : i32
    %142 = arith.index_cast %141 : i32 to index
    %c0_42 = arith.constant 0 : index
    %143 = vector.load %arg10[%142, %c0_42] : memref<64x128xf32, #tpu.memory_space<vmem>>, vector<8x128xf32>
    %144 = arith.truncf %137 : vector<8x32xf32> to vector<8x32xbf16>
    %cst_43 = arith.constant dense<0.000000e+00> : vector<8x128xf32>
    %145 = tpu.matmul %144, %15, %cst_43 {dimension_numbers = #tpu.dot_dimension_numbers<[1], [0], [0], [1], [0, 0, 1, 1], [], []>} : vector<8x32xbf16>, vector<32x128xbf16>, vector<8x128xf32> -> vector<8x128xf32>
    %146 = arith.addf %143, %145 : vector<8x128xf32>
    %147 = arith.negf %146 : vector<8x128xf32>
    %148 = math.exp %147 : vector<8x128xf32>
    %cst_44 = arith.constant 1.000000e+00 : f32
    %149 = vector.broadcast %cst_44 : f32 to vector<8x128xf32>
    %150 = arith.addf %149, %148 : vector<8x128xf32>
    %151 = arith.divf %149, %150 : vector<8x128xf32>
    %152 = vector.extract_strided_slice %151 {offsets = [0, 0], sizes = [8, 32], strides = [1, 1]} : vector<8x128xf32> to vector<8x32xf32>
    %153 = vector.extract_strided_slice %151 {offsets = [0, 32], sizes = [8, 32], strides = [1, 1]} : vector<8x128xf32> to vector<8x32xf32>
    %154 = vector.extract_strided_slice %151 {offsets = [0, 96], sizes = [8, 32], strides = [1, 1]} : vector<8x128xf32> to vector<8x32xf32>
    %155 = vector.extract_strided_slice %146 {offsets = [0, 64], sizes = [8, 32], strides = [1, 1]} : vector<8x128xf32> to vector<8x32xf32>
    %156 = math.tanh %155 : vector<8x32xf32>
    %157 = arith.mulf %153, %135 : vector<8x32xf32>
    %158 = arith.mulf %152, %156 : vector<8x32xf32>
    %159 = arith.addf %157, %158 : vector<8x32xf32>
    %160 = math.tanh %159 : vector<8x32xf32>
    %161 = arith.mulf %154, %160 : vector<8x32xf32>
    %162 = arith.index_cast %141 : i32 to index
    %c0_45 = arith.constant 0 : index
    %163 = vector.load %arg11[%162, %c0_45] : memref<64x32xf32, #tpu.memory_space<vmem>>, vector<8x32xf32>
    tpu.vector_store %arg11[%162, %c0_45], %161 {strides = array<i32>} : memref<64x32xf32, #tpu.memory_space<vmem>>, vector<8x32xf32>,
    %c6_i32 = arith.constant 6 : i32
    %c8_i32_46 = arith.constant 8 : i32
    %164 = arith.muli %c6_i32, %c8_i32_46 : i32
    %165 = tpu.assume_multiple %164, 8 : i32
    %166 = arith.index_cast %165 : i32 to index
    %c0_47 = arith.constant 0 : index
    %167 = vector.load %arg10[%166, %c0_47] : memref<64x128xf32, #tpu.memory_space<vmem>>, vector<8x128xf32>
    %168 = arith.truncf %161 : vector<8x32xf32> to vector<8x32xbf16>
    %cst_48 = arith.constant dense<0.000000e+00> : vector<8x128xf32>
    %169 = tpu.matmul %168, %15, %cst_48 {dimension_numbers = #tpu.dot_dimension_numbers<[1], [0], [0], [1], [0, 0, 1, 1], [], []>} : vector<8x32xbf16>, vector<32x128xbf16>, vector<8x128xf32> -> vector<8x128xf32>
    %170 = arith.addf %167, %169 : vector<8x128xf32>
    %171 = arith.negf %170 : vector<8x128xf32>
    %172 = math.exp %171 : vector<8x128xf32>
    %cst_49 = arith.constant 1.000000e+00 : f32
    %173 = vector.broadcast %cst_49 : f32 to vector<8x128xf32>
    %174 = arith.addf %173, %172 : vector<8x128xf32>
    %175 = arith.divf %173, %174 : vector<8x128xf32>
    %176 = vector.extract_strided_slice %175 {offsets = [0, 0], sizes = [8, 32], strides = [1, 1]} : vector<8x128xf32> to vector<8x32xf32>
    %177 = vector.extract_strided_slice %175 {offsets = [0, 32], sizes = [8, 32], strides = [1, 1]} : vector<8x128xf32> to vector<8x32xf32>
    %178 = vector.extract_strided_slice %175 {offsets = [0, 96], sizes = [8, 32], strides = [1, 1]} : vector<8x128xf32> to vector<8x32xf32>
    %179 = vector.extract_strided_slice %170 {offsets = [0, 64], sizes = [8, 32], strides = [1, 1]} : vector<8x128xf32> to vector<8x32xf32>
    %180 = math.tanh %179 : vector<8x32xf32>
    %181 = arith.mulf %177, %159 : vector<8x32xf32>
    %182 = arith.mulf %176, %180 : vector<8x32xf32>
    %183 = arith.addf %181, %182 : vector<8x32xf32>
    %184 = math.tanh %183 : vector<8x32xf32>
    %185 = arith.mulf %178, %184 : vector<8x32xf32>
    %186 = arith.index_cast %165 : i32 to index
    %c0_50 = arith.constant 0 : index
    %187 = vector.load %arg11[%186, %c0_50] : memref<64x32xf32, #tpu.memory_space<vmem>>, vector<8x32xf32>
    tpu.vector_store %arg11[%186, %c0_50], %185 {strides = array<i32>} : memref<64x32xf32, #tpu.memory_space<vmem>>, vector<8x32xf32>,
    %c7_i32 = arith.constant 7 : i32
    %c8_i32_51 = arith.constant 8 : i32
    %188 = arith.muli %c7_i32, %c8_i32_51 : i32
    %189 = tpu.assume_multiple %188, 8 : i32
    %190 = arith.index_cast %189 : i32 to index
    %c0_52 = arith.constant 0 : index
    %191 = vector.load %arg10[%190, %c0_52] : memref<64x128xf32, #tpu.memory_space<vmem>>, vector<8x128xf32>
    %192 = arith.truncf %185 : vector<8x32xf32> to vector<8x32xbf16>
    %cst_53 = arith.constant dense<0.000000e+00> : vector<8x128xf32>
    %193 = tpu.matmul %192, %15, %cst_53 {dimension_numbers = #tpu.dot_dimension_numbers<[1], [0], [0], [1], [0, 0, 1, 1], [], []>} : vector<8x32xbf16>, vector<32x128xbf16>, vector<8x128xf32> -> vector<8x128xf32>
    %194 = arith.addf %191, %193 : vector<8x128xf32>
    %195 = arith.negf %194 : vector<8x128xf32>
    %196 = math.exp %195 : vector<8x128xf32>
    %cst_54 = arith.constant 1.000000e+00 : f32
    %197 = vector.broadcast %cst_54 : f32 to vector<8x128xf32>
    %198 = arith.addf %197, %196 : vector<8x128xf32>
    %199 = arith.divf %197, %198 : vector<8x128xf32>
    %200 = vector.extract_strided_slice %199 {offsets = [0, 0], sizes = [8, 32], strides = [1, 1]} : vector<8x128xf32> to vector<8x32xf32>
    %201 = vector.extract_strided_slice %199 {offsets = [0, 32], sizes = [8, 32], strides = [1, 1]} : vector<8x128xf32> to vector<8x32xf32>
    %202 = vector.extract_strided_slice %199 {offsets = [0, 96], sizes = [8, 32], strides = [1, 1]} : vector<8x128xf32> to vector<8x32xf32>
    %203 = vector.extract_strided_slice %194 {offsets = [0, 64], sizes = [8, 32], strides = [1, 1]} : vector<8x128xf32> to vector<8x32xf32>
    %204 = math.tanh %203 : vector<8x32xf32>
    %205 = arith.mulf %201, %183 : vector<8x32xf32>
    %206 = arith.mulf %200, %204 : vector<8x32xf32>
    %207 = arith.addf %205, %206 : vector<8x32xf32>
    %208 = math.tanh %207 : vector<8x32xf32>
    %209 = arith.mulf %202, %208 : vector<8x32xf32>
    %210 = arith.index_cast %189 : i32 to index
    %c0_55 = arith.constant 0 : index
    %211 = vector.load %arg11[%210, %c0_55] : memref<64x32xf32, #tpu.memory_space<vmem>>, vector<8x32xf32>
    tpu.vector_store %arg11[%210, %c0_55], %209 {strides = array<i32>} : memref<64x32xf32, #tpu.memory_space<vmem>>, vector<8x32xf32>,
    %c8_i32_56 = arith.constant 8 : i32
    %c0_57 = arith.constant 0 : index
    %c0_58 = arith.constant 0 : index
    %c0_59 = arith.constant 0 : index
    %212 = vector.load %arg9[%c0_57, %c0_58, %c0_59] : memref<2x8x32xf32, #tpu.memory_space<vmem>>, vector<1x8x32xf32>
    %213 = vector.shape_cast %212 : vector<1x8x32xf32> to vector<8x32xf32>
    %214 = vector.shape_cast %209 : vector<8x32xf32> to vector<1x8x32xf32>
    tpu.vector_store %arg9[%c0_57, %c0_58, %c0_59], %214 {strides = array<i32>} : memref<2x8x32xf32, #tpu.memory_space<vmem>>, vector<1x8x32xf32>,
    %c1_60 = arith.constant 1 : index
    %c0_61 = arith.constant 0 : index
    %c0_62 = arith.constant 0 : index
    %215 = vector.load %arg9[%c1_60, %c0_61, %c0_62] : memref<2x8x32xf32, #tpu.memory_space<vmem>>, vector<1x8x32xf32>
    %216 = vector.shape_cast %215 : vector<1x8x32xf32> to vector<8x32xf32>
    %217 = vector.shape_cast %207 : vector<8x32xf32> to vector<1x8x32xf32>
    tpu.vector_store %arg9[%c1_60, %c0_61, %c0_62], %217 {strides = array<i32>} : memref<2x8x32xf32, #tpu.memory_space<vmem>>, vector<1x8x32xf32>,
    %c0_63 = arith.constant 0 : index
    %c0_64 = arith.constant 0 : index
    %218 = vector.load %arg11[%c0_63, %c0_64] : memref<64x32xf32, #tpu.memory_space<vmem>>, vector<64x32xf32>
    %c0_65 = arith.constant 0 : index
    %c0_66 = arith.constant 0 : index
    %219 = vector.load %arg6[%c0_65, %c0_66] : memref<32x64xf32, #tpu.memory_space<vmem>>, vector<32x64xf32>
    %cst_67 = arith.constant dense<0.000000e+00> : vector<64x64xf32>
    %220 = tpu.matmul %218, %219, %cst_67 {dimension_numbers = #tpu.dot_dimension_numbers<[1], [0], [0], [1], [0, 0, 1, 1], [], []>} : vector<64x32xf32>, vector<32x64xf32>, vector<64x64xf32> -> vector<64x64xf32>
    %c0_68 = arith.constant 0 : index
    %c0_69 = arith.constant 0 : index
    %221 = vector.load %arg7[%c0_68, %c0_69] : memref<1x64xf32, #tpu.memory_space<vmem>>, vector<1x64xf32>
    %222 = vector.broadcast %221 : vector<1x64xf32> to vector<64x64xf32>
    %223 = arith.addf %220, %222 : vector<64x64xf32>
    %c0_70 = arith.constant 0 : index
    %c0_71 = arith.constant 0 : index
    %224 = vector.load %arg8[%c0_70, %c0_71] : memref<64x64xf32, #tpu.memory_space<vmem>>, vector<64x64xf32>
    tpu.vector_store %arg8[%c0_70, %c0_71], %223 {strides = array<i32>} : memref<64x64xf32, #tpu.memory_space<vmem>>, vector<64x64xf32>,
    return
  }
}

</mosaic_0001>

<bundles_post_ra>
// kernel: textrnn_forward.1
= control target key start
LH: loop header
LB: loop body
LE: loop exit
PB: predicated region body
PF: predicated region fallthrough
CT: control target
= control target key end

     0   :  { %v1018_v0 = vmov 0   ;;  %v40_v17 = vlaneseq  ;;  %vm98_vm0 = vcmask 523264   ;;  %v1019_v20 = vmov 0.0   ;;  %s1373_s0 = inlined_call_operand.vmem [shape: s32[64,1], index: 0, kind: input, shape index: {}]   ;;  %s1374_s1 = inlined_call_operand.vmem [shape: f32[64,32], index: 1, kind: input, shape index: {}]   ;;  %s1375_s2 = inlined_call_operand.vmem [shape: f32[32,128], index: 2, kind: input, shape index: {}]   ;;  %s1376_s4 = inlined_call_operand.vmem [shape: f32[1,128], index: 4, kind: input, shape index: {}]   ;;  %s1377_s3 = inlined_call_operand.vmem [shape: f32[32,128], index: 3, kind: input, shape index: {}]   ;;  %s1378_s5 = inlined_call_operand.vmem [shape: f32[2,8,32], index: 5, kind: input, shape index: {}]   ;;  %s1379_s6 = inlined_call_operand.vmem [shape: f32[32,64], index: 6, kind: input, shape index: {}]   ;;  %s1380_s7 = inlined_call_operand.vmem [shape: f32[1,64], index: 7, kind: input, shape index: {}]   ;;  %s1381_s8 = inlined_call_operand.vmem [shape: f32[64,64], index: 8, kind: output, shape index: {0}]   ;;  %s1382_s9 = inlined_call_operand.vmem [shape: f32[2,8,32], index: 9, kind: output, shape index: {1}]  }
   0x1   :  { %950 = vset.pattern.permute.xlu1 %v1018_v0  ;;  %949 = vset.pattern.permute.xlu0 %v1018_v0  ;;  %v34_v1 = vld [vmem:[%s1373_s0 + $0x10] sm:$0xff]  ;;  %v32_v2 = vld [vmem:[%s1373_s0] sm:$0xff]  ;;  %v97_v4 = vld [vmem:[%s1374_s1 + $0x38] sm:$0xff]  ;;  %vm172_vm9 = vcmask 261120  }
   0x2   :  { %49 = vperm.xlu1 %950, %v34_v1   ;;  %43 = vperm.xlu0 %949, %v32_v2   ;;  %v36_v3 = vld [vmem:[%s1373_s0 + $0x20] sm:$0xff]  ;;  %v96_v5 = vld [vmem:[%s1374_s1 + $0x30] sm:$0xff]  ;;  %v95_v6 = vld [vmem:[%s1374_s1 + $0x28] sm:$0xff]  ;;  %v41_v18 = vand.u32 127, %v40_v17 }
   0x3   :  { %951 = vset.pattern.permute.xlu2 %v1018_v0  ;;  %131 = vmatpush.msra.mxu0 %v97_v4  ;;  %v35_v7 = vld [vmem:[%s1373_s0 + $0x18] sm:$0xff]  ;;  %v33_v8 = vld [vmem:[%s1373_s0 + $0x8] sm:$0xff]  ;;  %v94_v9 = vld [vmem:[%s1374_s1 + $0x20] sm:$0xff] }
   0x4   :  { %55 = vperm.xlu2 %951, %v36_v3   ;;  %v37_v10 = vld [vmem:[%s1373_s0 + $0x28] sm:$0xff]  ;;  %v93_v11 = vld [vmem:[%s1374_s1 + $0x18] sm:$0xff]  ;;  %v92_v12 = vld [vmem:[%s1374_s1 + $0x10] sm:$0xff] }
   0x5   :  { %132 = vmatpush.msra.mxu0 %v96_v5  ;;  %v91_v13 = vld [vmem:[%s1374_s1 + $0x8] sm:$0xff]  ;;  %v39_v14 = vld [vmem:[%s1373_s0 + $0x38] sm:$0xff]  ;;  %v38_v15 = vld [vmem:[%s1373_s0 + $0x30] sm:$0xff] }
   0x6   :  { %v90_v16 = vld [vmem:[%s1374_s1] sm:$0xff]  ;;  %v167_v29 = vld [vmem:[%s1375_s2 + $0x18] sm:$0xff]  ;;  %v166_v30 = vld [vmem:[%s1375_s2 + $0x10] sm:$0xff] }
   0x7   :  { %133 = vmatpush.msra.mxu0 %v95_v6  ;;  %209 = vmatpush.msra.mxu1 %v167_v29  ;;  %v165_v31 = vld [vmem:[%s1375_s2 + $0x8] sm:$0xff]  ;;  %v164_v39 = vld [vmem:[%s1375_s2] sm:$0xff]  ;;  %v248_v40 = vld [vmem:[%s1377_s3 + $0x10] sm:$0xff] }
   0x8   :  { %936 = vmatpush.msra.mxu2 %v167_v29  ;;  %937 = vmatpush.msra.mxu3 %v167_v29  ;;  %v249_v41 = vld [vmem:[%s1377_s3 + $0x18] sm:$0xff]  ;;  %v246_v44 = vld [vmem:[%s1377_s3] sm:$0xff]  ;;  %v247_v45 = vld [vmem:[%s1377_s3 + $0x8] sm:$0xff]  ;;  %s1020_s3 = smov 32  }
   0x9   :  { %134 = vmatpush.msra.mxu0 %v94_v9  ;;  %210 = vmatpush.msra.mxu1 %v166_v30  ;;  %v1147_v42 = vpack.c.bf16 %v249_v41, %v248_v40  ;;  %v1158_v46 = vpack.c.bf16 %v247_v45, %v246_v44  ;;  %v910_v50 = vld [vmem:[%s1378_s5 + $0x8] sm:$0xff]  ;;  %v252_v53 = vld [vmem:[%s1378_s5] sm:$0xff] }
   0xa   :  { %52 = vperm.xlu1 %950, %v35_v7   ;;  %46 = vperm.xlu0 %949, %v33_v8   ;;  %v256_v54 = vpack.c.bf16 %v252_v53, %v252_v53  ;;  %v1186_v57 = vld [vmem:[%s1376_s4] ss:$0 sm:$0xff]  ;;  %s1021_s4 = smov 64  }
   0xb   :  { %135 = vmatpush.msra.mxu0 %v93_v11  ;;  %938 = vmatpush.msra.mxu2 %v166_v30 }
   0xc   :  { %58 = vperm.xlu2 %951, %v37_v10   ;;  %939 = vmatpush.msra.mxu3 %v166_v30 }
   0xd   :  { %136 = vmatpush.msra.mxu0 %v92_v12  ;;  %211 = vmatpush.msra.mxu1 %v165_v31 }
   0xe   :  { %940 = vmatpush.msra.mxu2 %v165_v31  ;;  %941 = vmatpush.msra.mxu3 %v165_v31 }
   0xf   :  { %137 = vmatpush.msra.mxu0 %v91_v13  ;;  %212 = vmatpush.msra.mxu1 %v164_v39 }
  0x10   :  { %942 = vmatpush.msra.mxu2 %v164_v39  ;;  %943 = vmatpush.msra.mxu3 %v164_v39 }
  0x11   :  { %138 = vmatpush.msra.mxu0 %v90_v16 }
  0x12   :  { %64 = vperm.xlu1 %950, %v39_v14   ;;  %61 = vperm.xlu0 %949, %v38_v15  }
  0x13   :  { %266 = vmatpush.bf16.msrb.mxu2 %v1147_v42  ;;  %335 = vmatpush.bf16.msrb.mxu3 %v1147_v42 }
  0x17   :  { %267 = vmatpush.bf16.msrb.mxu2 %v1158_v46  ;;  %336 = vmatpush.bf16.msrb.mxu3 %v1158_v46 }
  0x1a   :  { %295 = vrot.lane.b32.xlu0 %v910_v50, %s1020_s3 }
  0x5e   :  { %v56_v28 = vpop.permute.xlu2 %55 }
  0x5f   :  { %vm70_vm5 = vcmp.eq.s32.totalorder %v41_v18, %v56_v28 }
  0x60   :  { %v890_v32 = vsel %vm70_vm5, 1.0, %v1019_v20 }
  0x66   :  { %v59_v33 = vpop.permute.xlu2 %58 }
  0x67   :  { %vm71_vm6 = vcmp.eq.s32.totalorder %v41_v18, %v59_v33 }
  0x68   :  { %v891_v34 = vsel %vm71_vm6, 1.0, %v1019_v20 }
  0x74   :  { %v44_v19 = vpop.permute.xlu0 %43  ;;  %v50_v24 = vpop.permute.xlu1 %49 }
  0x75   :  { %vm66_vm1 = vcmp.eq.s32.totalorder %v41_v18, %v44_v19  ;;  %vm68_vm3 = vcmp.eq.s32.totalorder %v41_v18, %v50_v24 }
  0x76   :  { %v886_v21 = vsel %vm66_vm1, 1.0, %v1019_v20  ;;  %v888_v25 = vsel %vm68_vm3, 1.0, %v1019_v20 }
  0x77   :  { %894 = vmatmul.msk.f32.vlgmr.msra.gmra.mxu0 %vm98_vm0, %v886_v21 }
  0x7c   :  { %v47_v22 = vpop.permute.xlu0 %46  ;;  %v53_v26 = vpop.permute.xlu1 %52 }
  0x7d   :  { %vm67_vm2 = vcmp.eq.s32.totalorder %v41_v18, %v47_v22  ;;  %vm69_vm4 = vcmp.eq.s32.totalorder %v41_v18, %v53_v26 }
  0x7e   :  { %v887_v23 = vsel %vm67_vm2, 1.0, %v1019_v20  ;;  %v889_v27 = vsel %vm69_vm4, 1.0, %v1019_v20 }
  0x7f   :  { %895 = vmatmul.msk.f32.gmra.mxu0 %vm98_vm0, %v887_v23 }
  0x84   :  { %v62_v35 = vpop.permute.xlu0 %61  ;;  %v65_v37 = vpop.permute.xlu1 %64 }
  0x85   :  { %vm72_vm7 = vcmp.eq.s32.totalorder %v41_v18, %v62_v35  ;;  %vm73_vm8 = vcmp.eq.s32.totalorder %v41_v18, %v65_v37 }
  0x86   :  { %v892_v36 = vsel %vm72_vm7, 1.0, %v1019_v20  ;;  %v893_v38 = vsel %vm73_vm8, 1.0, %v1019_v20 }
  0x87   :  { %896 = vmatmul.msk.f32.gmra.mxu0 %vm98_vm0, %v888_v25 }
  0x8c   :  { %v296_v23 = vpop.permute.xlu0 %295 }
  0x8f   :  { %897 = vmatmul.msk.f32.gmra.mxu0 %vm98_vm0, %v889_v27 }
  0x97   :  { %898 = vmatmul.msk.f32.gmra.mxu0 %vm98_vm0, %v890_v32 }
  0x9f   :  { %899 = vmatmul.msk.f32.gmra.mxu0 %vm98_vm0, %v891_v34 }
  0xa7   :  { %900 = vmatmul.msk.f32.gmra.mxu0 %vm98_vm0, %v892_v36 }
  0xaf   :  { %901 = vmatmul.msk.f32.gmra.mxu0 %vm98_vm0, %v893_v38 }
  0xf4   :  { %v140_v43 = vpop.f32.mrf.mxu0 }
  0xf5   :  { %902 = vmatmul.msk.f32.vlgmr.msra.gmra.mxu1 %vm172_vm9, %v140_v43 }
  0xfc   :  { %v143_v47 = vpop.f32.mrf.mxu0 }
  0xfd   :  { %903 = vmatmul.msk.f32.gmra.mxu1 %vm172_vm9, %v143_v47 }
 0x104   :  { %v146_v48 = vpop.f32.mrf.mxu0 }
 0x105   :  { %904 = vmatmul.msk.f32.gmra.mxu1 %vm172_vm9, %v146_v48 }
 0x10c   :  { %v149_v49 = vpop.f32.mrf.mxu0 }
 0x10d   :  { %905 = vmatmul.msk.f32.vlgmr.msra.gmra.mxu2 %vm172_vm9, %v149_v49 }
 0x10e   :  { %401 = vmatpush.bf16.msra.mxu2 %v1147_v42 }
 0x112   :  { %402 = vmatpush.bf16.msra.mxu2 %v1158_v46 }
 0x114   :  { %v152_v51 = vpop.f32.mrf.mxu0 }
 0x115   :  { %906 = vmatmul.msk.f32.gmra.mxu2 %vm172_vm9, %v152_v51 }
 0x11c   :  { %v155_v52 = vpop.f32.mrf.mxu0 }
 0x11d   :  { %907 = vmatmul.msk.f32.gmra.mxu2 %vm172_vm9, %v155_v52 }
 0x124   :  { %v158_v55 = vpop.f32.mrf.mxu0 }
 0x125   :  { %908 = vmatmul.msk.f32.vlgmr.msra.gmra.mxu3 %vm172_vm9, %v158_v55  ;;  %911 = vmatmul.msk.bf16.vlgmr.msrb.gmra.mxu2 %vm172_vm9, %v256_v54 }
 0x126   :  { %467 = vmatpush.bf16.msra.mxu3 %v1147_v42  ;;  %533 = vmatpush.bf16.msrb.mxu2 %v1147_v42 }
 0x12a   :  { %468 = vmatpush.bf16.msra.mxu3 %v1158_v46  ;;  %534 = vmatpush.bf16.msrb.mxu2 %v1158_v46 }
 0x12c   :  { %v161_v56 = vpop.f32.mrf.mxu0 }
 0x12d   :  { %909 = vmatmul.msk.f32.gmra.mxu3 %vm172_vm9, %v161_v56 }
 0x172   :  { %v214_v0 = vpop.f32.mrf.mxu1 }
 0x173   :  { %v215_v1 = vadd.f32 %v1186_v57, %v214_v0 }
 0x17a   :  { %v217_v33 = vpop.f32.mrf.mxu1 }
 0x17b   :  { %v218_v34 = vadd.f32 %v1186_v57, %v217_v33 }
 0x190   :  { %v223_v58 = vpop.f32.mrf.mxu2 }
 0x191   :  { %v1189_v59 = vadd.f32 %v1186_v57, %v223_v58 }
 0x198   :  { %v226_v60 = vpop.f32.mrf.mxu2 }
 0x199   :  { %v1192_v61 = vadd.f32 %v1186_v57, %v226_v60 }
 0x1a0   :  { %v229_v62 = vpop.f32.mrf.mxu2 }
 0x1a1   :  { %v1195_v63 = vadd.f32 %v1186_v57, %v229_v62 }
 0x1a8   :  { %v232_v2 = vpop.f32.mrf.mxu3  ;;  %v269_v3 = vpop.f32.mrf.mxu2 }
 0x1a9   :  { %v1199_v4 = vadd.f32 %v1186_v57, %v232_v2  ;;  %v273_v5 = vadd.f32 %v269_v3, %v215_v1 }
 0x1ab   :  { %954 = vtanh.f32 %v273_v5  ;;  %v912_v8 = vmul.f32 -1.442695, %v273_v5  ;;  %v220_v5 = vpop.f32.mrf.mxu1 }
 0x1ad   :  { %956 = vpow2.f32 %v912_v8 }
 0x1b0   :  { %v271_v6 = vpop.f32.mrf.mxu2  ;;  %v1212_v32 = vpop.f32.mrf.mxu3 }
 0x1b1   :  { %v955_v7 = vpop.eup %954  ;;  %v221_v6 = vadd.f32 %v1186_v57, %v220_v5 }
 0x1b2   :  { %300 = vrot.lane.b32.xlu2 %v955_v7, %s1021_s4 }
 0x1b3   :  { %v957_v9 = vpop.eup %956 }
 0x1b4   :  { %v277_v10 = vadd.f32 1.0, %v957_v9 }
 0x1b6   :  { %958 = vrcp.f32 %v277_v10  ;;  %v289_v16 = vand.u32 2147483648, %v277_v10  ;;  %vm283_vm11 = vweird.f32 %v277_v10  ;;  %v287_v17 = vand.u32 2147483647, %v277_v10 }
 0x1b8   :  { %v290_v19 = vor.u32 1.1754944e-38, %v289_v16  ;;  %vm288_vm13 = vcmp.eq.f32.partialorder %v287_v17, 8.507059e+37 }
 0x1bc   :  { %v959_v11 = vpop.eup %958 }
 0x1bd   :  { %v279_v12 = vmul.f32 %v959_v11, %v277_v10  ;;  %vm284_vm10 = vweird.f32 %v959_v11 }
 0x1be   :  { %vm285_vm12 = vmor %vm283_vm11, %vm284_vm10 }
 0x1bf   :  { %v280_v13 = vsub.f32 1.0, %v279_v12 }
 0x1c1   :  { %v281_v14 = vmul.f32 %v959_v11, %v280_v13 }
 0x1c3   :  { %v282_v15 = vadd.f32 %v959_v11, %v281_v14 }
 0x1c5   :  { %v286_v18 = vsel %vm285_vm12, %v959_v11, %v282_v15 }
 0x1c6   :  { %v291_v20 = vsel %vm288_vm13, %v290_v19, %v286_v18 }
 0x1c7   :  { %v298_v24 = vmul.f32 %v296_v23, %v291_v20 }
 0x20c   :  { %v301_v21 = vpop.permute.xlu2 %300 }
 0x20d   :  { %v303_v22 = vmul.f32 %v301_v21, %v291_v20 }
 0x20f   :  { %305 = vrot.lane.b32.xlu1 %v303_v22, %s1020_s3 }
 0x281   :  { %v306_v25 = vpop.permute.xlu1 %305 }
 0x282   :  { %v308_v26 = vadd.f32 %v306_v25, %v298_v24 }
 0x284   :  { %960 = vtanh.f32 %v308_v26 }
 0x28a   :  { %v961_v27 = vpop.eup %960 }
 0x28b   :  { %311 = vrot.lane.b32.xlu2 %v961_v27, %s1021_s4 }
 0x2e5   :  { %v312_v28 = vpop.permute.xlu2 %311 }
 0x2e6   :  { %v1204_v29 = vmul.f32 %v312_v28, %v291_v20 }
 0x2e8   :  { %v322_v30 = vpack.c.bf16 %v1204_v29, %v1204_v29 }
 0x2ea   :  { %324 = vrot.lane.b32.xlu0 %v322_v30, %s1020_s3 }
 0x35c   :  { %v325_v31 = vpop.permute.xlu0 %324 }
 0x35d   :  { %913 = vmatmul.msk.bf16.vlgmr.msrb.gmra.mxu3 %vm172_vm9, %v325_v31 }
 0x35e   :  { %599 = vmatpush.bf16.msrb.mxu3 %v1147_v42 }
 0x362   :  { %600 = vmatpush.bf16.msrb.mxu3 %v1158_v46 }
 0x3e0   :  { %v338_v35 = vpop.f32.mrf.mxu3 }
 0x3e1   :  { %v342_v36 = vadd.f32 %v338_v35, %v218_v34 }
 0x3e3   :  { %962 = vtanh.f32 %v342_v36  ;;  %v914_v39 = vmul.f32 -1.442695, %v342_v36 }
 0x3e5   :  { %964 = vpow2.f32 %v914_v39 }
 0x3e8   :  { %v340_v37 = vpop.f32.mrf.mxu3 }
 0x3e9   :  { %v963_v38 = vpop.eup %962 }
 0x3ea   :  { %365 = vrot.lane.b32.xlu1 %v963_v38, %s1021_s4 }
 0x3eb   :  { %v965_v40 = vpop.eup %964 }
 0x3ec   :  { %v346_v41 = vadd.f32 1.0, %v965_v40 }
 0x3ee   :  { %966 = vrcp.f32 %v346_v41  ;;  %v358_v49 = vand.u32 2147483648, %v346_v41  ;;  %vm352_vm15 = vweird.f32 %v346_v41  ;;  %v356_v50 = vand.u32 2147483647, %v346_v41 }
 0x3f0   :  { %v359_v52 = vor.u32 1.1754944e-38, %v358_v49  ;;  %vm357_vm2 = vcmp.eq.f32.partialorder %v356_v50, 8.507059e+37 }
 0x3f4   :  { %v967_v43 = vpop.eup %966 }
 0x3f5   :  { %v348_v44 = vmul.f32 %v967_v43, %v346_v41  ;;  %vm353_vm14 = vweird.f32 %v967_v43 }
 0x3f6   :  { %vm354_vm1 = vmor %vm352_vm15, %vm353_vm14 }
 0x3f7   :  { %v349_v45 = vsub.f32 1.0, %v348_v44 }
 0x3f9   :  { %v350_v47 = vmul.f32 %v967_v43, %v349_v45 }
 0x3fb   :  { %v351_v48 = vadd.f32 %v967_v43, %v350_v47 }
 0x3fd   :  { %v355_v51 = vsel %vm354_vm1, %v967_v43, %v351_v48 }
 0x3fe   :  { %v360_v54 = vsel %vm357_vm2, %v359_v52, %v355_v51 }
 0x3ff   :  { %v363_v56 = vmul.f32 %v360_v54, %v308_v26 }
 0x45c   :  { %v366_v53 = vpop.permute.xlu1 %365 }
 0x45d   :  { %v368_v55 = vmul.f32 %v366_v53, %v360_v54 }
 0x45f   :  { %370 = vrot.lane.b32.xlu2 %v368_v55, %s1020_s3 }
 0x4b9   :  { %v371_v58 = vpop.permute.xlu2 %370 }
 0x4ba   :  { %v373_v60 = vadd.f32 %v371_v58, %v363_v56 }
 0x4bc   :  { %968 = vtanh.f32 %v373_v60 }
 0x4c2   :  { %v969_v62 = vpop.eup %968 }
 0x4c3   :  { %376 = vrot.lane.b32.xlu0 %v969_v62, %s1021_s4 }
 0x535   :  { %v377_v0 = vpop.permute.xlu0 %376 }
 0x536   :  { %v1218_v1 = vmul.f32 %v377_v0, %v360_v54 }
 0x538   :  { %v388_v2 = vpack.c.bf16 %v1218_v1, %v1218_v1 }
 0x53a   :  { %390 = vrot.lane.b32.xlu1 %v388_v2, %s1020_s3 }
 0x5ac   :  { %v391_v3 = vpop.permute.xlu1 %390 }
 0x5ad   :  { %915 = vmatmul.msk.bf16.vlgmr.msra.gmra.mxu2 %vm172_vm9, %v391_v3 }
 0x5ae   :  { %665 = vmatpush.bf16.msra.mxu2 %v1147_v42 }
 0x5b2   :  { %666 = vmatpush.bf16.msra.mxu2 %v1158_v46 }
 0x630   :  { %v404_v7 = vpop.f32.mrf.mxu2 }
 0x631   :  { %v408_v8 = vadd.f32 %v404_v7, %v221_v6 }
 0x633   :  { %970 = vtanh.f32 %v408_v8  ;;  %v916_v11 = vmul.f32 -1.442695, %v408_v8 }
 0x635   :  { %972 = vpow2.f32 %v916_v11 }
 0x638   :  { %v406_v9 = vpop.f32.mrf.mxu2 }
 0x639   :  { %v971_v10 = vpop.eup %970 }
 0x63a   :  { %431 = vrot.lane.b32.xlu2 %v971_v10, %s1021_s4 }
 0x63b   :  { %v973_v12 = vpop.eup %972 }
 0x63c   :  { %v412_v13 = vadd.f32 1.0, %v973_v12 }
 0x63e   :  { %974 = vrcp.f32 %v412_v13  ;;  %v424_v19 = vand.u32 2147483648, %v412_v13  ;;  %vm418_vm4 = vweird.f32 %v412_v13  ;;  %v422_v20 = vand.u32 2147483647, %v412_v13 }
 0x640   :  { %v425_v22 = vor.u32 1.1754944e-38, %v424_v19  ;;  %vm423_vm6 = vcmp.eq.f32.partialorder %v422_v20, 8.507059e+37 }
 0x644   :  { %v975_v14 = vpop.eup %974 }
 0x645   :  { %v414_v15 = vmul.f32 %v975_v14, %v412_v13  ;;  %vm419_vm3 = vweird.f32 %v975_v14 }
 0x646   :  { %vm420_vm5 = vmor %vm418_vm4, %vm419_vm3 }
 0x647   :  { %v415_v16 = vsub.f32 1.0, %v414_v15 }
 0x649   :  { %v416_v17 = vmul.f32 %v975_v14, %v415_v16 }
 0x64b   :  { %v417_v18 = vadd.f32 %v975_v14, %v416_v17 }
 0x64d   :  { %v421_v21 = vsel %vm420_vm5, %v975_v14, %v417_v18 }
 0x64e   :  { %v426_v24 = vsel %vm423_vm6, %v425_v22, %v421_v21 }
 0x64f   :  { %v429_v26 = vmul.f32 %v426_v24, %v373_v60 }
 0x694   :  { %v432_v23 = vpop.permute.xlu2 %431 }
 0x695   :  { %v434_v25 = vmul.f32 %v432_v23, %v426_v24 }
 0x697   :  { %436 = vrot.lane.b32.xlu0 %v434_v25, %s1020_s3 }
 0x709   :  { %v437_v27 = vpop.permute.xlu0 %436 }
 0x70a   :  { %v439_v28 = vadd.f32 %v437_v27, %v429_v26 }
 0x70c   :  { %976 = vtanh.f32 %v439_v28 }
 0x712   :  { %v977_v30 = vpop.eup %976 }
 0x713   :  { %442 = vrot.lane.b32.xlu1 %v977_v30, %s1021_s4 }
 0x785   :  { %v443_v31 = vpop.permute.xlu1 %442 }
 0x786   :  { %v1230_v33 = vmul.f32 %v443_v31, %v426_v24 }
 0x788   :  { %v454_v34 = vpack.c.bf16 %v1230_v33, %v1230_v33 }
 0x78a   :  { %456 = vrot.lane.b32.xlu2 %v454_v34, %s1020_s3 }
 0x7e4   :  { %v457_v35 = vpop.permute.xlu2 %456 }
 0x7e5   :  { %917 = vmatmul.msk.bf16.vlgmr.msra.gmra.mxu3 %vm172_vm9, %v457_v35 }
 0x7e6   :  { %731 = vmatpush.bf16.msra.mxu3 %v1147_v42 }
 0x7ea   :  { %732 = vmatpush.bf16.msra.mxu3 %v1158_v46 }
 0x868   :  { %v470_v36 = vpop.f32.mrf.mxu3 }
 0x869   :  { %v474_v37 = vadd.f32 %v470_v36, %v1189_v59 }
 0x86b   :  { %978 = vtanh.f32 %v474_v37  ;;  %v918_v40 = vmul.f32 -1.442695, %v474_v37 }
 0x86d   :  { %980 = vpow2.f32 %v918_v40 }
 0x870   :  { %v472_v38 = vpop.f32.mrf.mxu3 }
 0x871   :  { %v979_v39 = vpop.eup %978 }
 0x872   :  { %497 = vrot.lane.b32.xlu0 %v979_v39, %s1021_s4 }
 0x873   :  { %v981_v41 = vpop.eup %980 }
 0x874   :  { %v478_v43 = vadd.f32 1.0, %v981_v41 }
 0x876   :  { %982 = vrcp.f32 %v478_v43  ;;  %v490_v46 = vand.u32 2147483648, %v478_v43  ;;  %vm484_vm8 = vweird.f32 %v478_v43  ;;  %v488_v49 = vand.u32 2147483647, %v478_v43 }
 0x878   :  { %v491_v50 = vor.u32 1.1754944e-38, %v490_v46  ;;  %vm489_vm11 = vcmp.eq.f32.partialorder %v488_v49, 8.507059e+37 }
 0x87c   :  { %v983_v44 = vpop.eup %982 }
 0x87d   :  { %v480_v45 = vmul.f32 %v983_v44, %v478_v43  ;;  %vm485_vm7 = vweird.f32 %v983_v44 }
 0x87e   :  { %vm486_vm10 = vmor %vm484_vm8, %vm485_vm7 }
 0x87f   :  { %v481_v47 = vsub.f32 1.0, %v480_v45 }
 0x881   :  { %v482_v48 = vmul.f32 %v983_v44, %v481_v47 }
 0x883   :  { %v483_v42 = vadd.f32 %v983_v44, %v482_v48 }
 0x885   :  { %v487_v59 = vsel %vm486_vm10, %v983_v44, %v483_v42 }
 0x886   :  { %v492_v52 = vsel %vm489_vm11, %v491_v50, %v487_v59 }
 0x887   :  { %v495_v54 = vmul.f32 %v492_v52, %v439_v28 }
 0x8e4   :  { %v498_v51 = vpop.permute.xlu0 %497 }
 0x8e5   :  { %v500_v53 = vmul.f32 %v498_v51, %v492_v52 }
 0x8e7   :  { %502 = vrot.lane.b32.xlu1 %v500_v53, %s1020_s3 }
 0x959   :  { %v503_v55 = vpop.permute.xlu1 %502 }
 0x95a   :  { %v505_v56 = vadd.f32 %v503_v55, %v495_v54 }
 0x95c   :  { %984 = vtanh.f32 %v505_v56 }
 0x962   :  { %v985_v58 = vpop.eup %984 }
 0x963   :  { %508 = vrot.lane.b32.xlu2 %v985_v58, %s1021_s4 }
 0x9bd   :  { %v509_v60 = vpop.permute.xlu2 %508 }
 0x9be   :  { %v1242_v62 = vmul.f32 %v509_v60, %v492_v52 }
 0x9c0   :  { %v520_v0 = vpack.c.bf16 %v1242_v62, %v1242_v62 }
 0x9c2   :  { %522 = vrot.lane.b32.xlu0 %v520_v0, %s1020_s3 }
 0xa34   :  { %v523_v2 = vpop.permute.xlu0 %522 }
 0xa35   :  { %919 = vmatmul.msk.bf16.vlgmr.msrb.gmra.mxu2 %vm172_vm9, %v523_v2 }
 0xab8   :  { %v536_v3 = vpop.f32.mrf.mxu2 }
 0xab9   :  { %v540_v5 = vadd.f32 %v536_v3, %v1192_v61 }
 0xabb   :  { %986 = vtanh.f32 %v540_v5  ;;  %v920_v8 = vmul.f32 -1.442695, %v540_v5 }
 0xabd   :  { %988 = vpow2.f32 %v920_v8 }
 0xac0   :  { %v538_v6 = vpop.f32.mrf.mxu2 }
 0xac1   :  { %v987_v7 = vpop.eup %986 }
 0xac2   :  { %563 = vrot.lane.b32.xlu1 %v987_v7, %s1021_s4 }
 0xac3   :  { %v989_v9 = vpop.eup %988 }
 0xac4   :  { %v544_v10 = vadd.f32 1.0, %v989_v9 }
 0xac6   :  { %990 = vrcp.f32 %v544_v10  ;;  %v556_v16 = vand.u32 2147483648, %v544_v10  ;;  %vm550_vm13 = vweird.f32 %v544_v10  ;;  %v554_v17 = vand.u32 2147483647, %v544_v10 }
 0xac8   :  { %v557_v18 = vor.u32 1.1754944e-38, %v556_v16  ;;  %vm555_vm15 = vcmp.eq.f32.partialorder %v554_v17, 8.507059e+37 }
 0xacc   :  { %v991_v11 = vpop.eup %990 }
 0xacd   :  { %v546_v12 = vmul.f32 %v991_v11, %v544_v10  ;;  %vm551_vm12 = vweird.f32 %v991_v11 }
 0xace   :  { %vm552_vm14 = vmor %vm550_vm13, %vm551_vm12 }
 0xacf   :  { %v547_v13 = vsub.f32 1.0, %v546_v12 }
 0xad1   :  { %v548_v14 = vmul.f32 %v991_v11, %v547_v13 }
 0xad3   :  { %v549_v15 = vadd.f32 %v991_v11, %v548_v14 }
 0xad5   :  { %v553_v61 = vsel %vm552_vm14, %v991_v11, %v549_v15 }
 0xad6   :  { %v558_v20 = vsel %vm555_vm15, %v557_v18, %v553_v61 }
 0xad7   :  { %v561_v22 = vmul.f32 %v558_v20, %v505_v56 }
 0xb34   :  { %v564_v19 = vpop.permute.xlu1 %563 }
 0xb35   :  { %v566_v21 = vmul.f32 %v564_v19, %v558_v20 }
 0xb37   :  { %568 = vrot.lane.b32.xlu2 %v566_v21, %s1020_s3 }
 0xb91   :  { %v569_v23 = vpop.permute.xlu2 %568 }
 0xb92   :  { %v571_v24 = vadd.f32 %v569_v23, %v561_v22 }
 0xb94   :  { %992 = vtanh.f32 %v571_v24 }
 0xb9a   :  { %v993_v25 = vpop.eup %992 }
 0xb9b   :  { %574 = vrot.lane.b32.xlu0 %v993_v25, %s1021_s4  ;;  %v800_v25 = vld [vmem:[%s1379_s6 + $0x18] sm:$0xff] }
 0xb9c   :  { %841 = vmatpush.msrb.mxu1 %v800_v25 }
 0xc0d   :  { %v575_v26 = vpop.permute.xlu0 %574 }
 0xc0e   :  { %v1252_v27 = vmul.f32 %v575_v26, %v558_v20  ;;  %v799_v26 = vld [vmem:[%s1379_s6 + $0x10] sm:$0xff] }
 0xc0f   :  { %842 = vmatpush.msrb.mxu1 %v799_v26 }
 0xc10   :  { %v586_v28 = vpack.c.bf16 %v1252_v27, %v1252_v27 }
 0xc12   :  { %588 = vrot.lane.b32.xlu1 %v586_v28, %s1020_s3  ;;  %v798_v28 = vld [vmem:[%s1379_s6 + $0x8] sm:$0xff] }
 0xc13   :  { %843 = vmatpush.msrb.mxu1 %v798_v28 }
 0xc84   :  { %v589_v30 = vpop.permute.xlu1 %588 }
 0xc85   :  { %921 = vmatmul.msk.bf16.vlgmr.msrb.gmra.mxu3 %vm172_vm9, %v589_v30 }
 0xd08   :  { %v602_v31 = vpop.f32.mrf.mxu3 }
 0xd09   :  { %v606_v34 = vadd.f32 %v602_v31, %v1195_v63 }
 0xd0b   :  { %994 = vtanh.f32 %v606_v34  ;;  %v922_v37 = vmul.f32 -1.442695, %v606_v34 }
 0xd0d   :  { %996 = vpow2.f32 %v922_v37 }
 0xd10   :  { %v604_v35 = vpop.f32.mrf.mxu3 }
 0xd11   :  { %v995_v36 = vpop.eup %994 }
 0xd12   :  { %629 = vrot.lane.b32.xlu2 %v995_v36, %s1021_s4  ;;  %v236_v36 = vadd.f32 %v1186_v57, %v1212_v32 }
 0xd13   :  { %v997_v38 = vpop.eup %996 }
 0xd14   :  { %v610_v39 = vadd.f32 1.0, %v997_v38 }
 0xd16   :  { %998 = vrcp.f32 %v610_v39  ;;  %v622_v47 = vand.u32 2147483648, %v610_v39  ;;  %vm616_vm2 = vweird.f32 %v610_v39  ;;  %v620_v48 = vand.u32 2147483647, %v610_v39 }
 0xd18   :  { %v623_v42 = vor.u32 1.1754944e-38, %v622_v47  ;;  %vm621_vm4 = vcmp.eq.f32.partialorder %v620_v48, 8.507059e+37 }
 0xd1c   :  { %v999_v40 = vpop.eup %998 }
 0xd1d   :  { %v612_v41 = vmul.f32 %v999_v40, %v610_v39  ;;  %vm617_vm1 = vweird.f32 %v999_v40  ;;  %v1299_v39 = vld [vmem:[%s1380_s7] ss:$0 sm:$0xff]  ;;  %s1022_s7 = smov 96  }
 0xd1e   :  { %vm618_vm3 = vmor %vm616_vm2, %vm617_vm1 }
 0xd1f   :  { %v613_v43 = vsub.f32 1.0, %v612_v41 }
 0xd21   :  { %v614_v44 = vmul.f32 %v999_v40, %v613_v43 }
 0xd23   :  { %v615_v45 = vadd.f32 %v999_v40, %v614_v44 }
 0xd25   :  { %v619_v63 = vsel %vm618_vm3, %v999_v40, %v615_v45 }
 0xd26   :  { %v624_v49 = vsel %vm621_vm4, %v623_v42, %v619_v63 }
 0xd27   :  { %v627_v50 = vmul.f32 %v624_v49, %v571_v24 }
 0xd6c   :  { %v630_v46 = vpop.permute.xlu2 %629 }
 0xd6d   :  { %v632_v59 = vmul.f32 %v630_v46, %v624_v49 }
 0xd6f   :  { %634 = vrot.lane.b32.xlu0 %v632_v59, %s1020_s3 }
 0xde1   :  { %v635_v51 = vpop.permute.xlu0 %634 }
 0xde2   :  { %v637_v52 = vadd.f32 %v635_v51, %v627_v50 }
 0xde4   :  { %1000 = vtanh.f32 %v637_v52 }
 0xdea   :  { %v1001_v53 = vpop.eup %1000 }
 0xdeb   :  { %640 = vrot.lane.b32.xlu1 %v1001_v53, %s1021_s4 }
 0xe5d   :  { %v641_v54 = vpop.permute.xlu1 %640 }
 0xe5e   :  { %v643_v55 = vmul.f32 %v641_v54, %v624_v49 }
 0xe60   :  { %v652_v56 = vpack.c.bf16 %v643_v55, %v643_v55 }
 0xe62   :  { %654 = vrot.lane.b32.xlu2 %v652_v56, %s1020_s3 }
 0xebc   :  { %v655_v58 = vpop.permute.xlu2 %654 }
 0xebd   :  { %923 = vmatmul.msk.bf16.vlgmr.msra.gmra.mxu2 %vm172_vm9, %v655_v58 }
 0xf40   :  { %v668_v60 = vpop.f32.mrf.mxu2 }
 0xf41   :  { %v672_v0 = vadd.f32 %v668_v60, %v1199_v4 }
 0xf43   :  { %1002 = vtanh.f32 %v672_v0  ;;  %v924_v5 = vmul.f32 -1.442695, %v672_v0 }
 0xf45   :  { %1004 = vpow2.f32 %v924_v5 }
 0xf48   :  { %v670_v2 = vpop.f32.mrf.mxu2 }
 0xf49   :  { %v1003_v3 = vpop.eup %1002 }
 0xf4a   :  { %695 = vrot.lane.b32.xlu0 %v1003_v3, %s1021_s4 }
 0xf4b   :  { %v1005_v6 = vpop.eup %1004 }
 0xf4c   :  { %v676_v7 = vadd.f32 1.0, %v1005_v6 }
 0xf4e   :  { %1006 = vrcp.f32 %v676_v7  ;;  %v688_v13 = vand.u32 2147483648, %v676_v7  ;;  %vm682_vm6 = vweird.f32 %v676_v7  ;;  %v686_v14 = vand.u32 2147483647, %v676_v7 }
 0xf50   :  { %v689_v15 = vor.u32 1.1754944e-38, %v688_v13  ;;  %vm687_vm8 = vcmp.eq.f32.partialorder %v686_v14, 8.507059e+37 }
 0xf54   :  { %v1007_v8 = vpop.eup %1006 }
 0xf55   :  { %v678_v9 = vmul.f32 %v1007_v8, %v676_v7  ;;  %vm683_vm5 = vweird.f32 %v1007_v8 }
 0xf56   :  { %vm684_vm7 = vmor %vm682_vm6, %vm683_vm5 }
 0xf57   :  { %v679_v10 = vsub.f32 1.0, %v678_v9 }
 0xf59   :  { %v680_v11 = vmul.f32 %v1007_v8, %v679_v10 }
 0xf5b   :  { %v681_v12 = vadd.f32 %v1007_v8, %v680_v11 }
 0xf5d   :  { %v685_v4 = vsel %vm684_vm7, %v1007_v8, %v681_v12 }
 0xf5e   :  { %v690_v17 = vsel %vm687_vm8, %v689_v15, %v685_v4 }
 0xf5f   :  { %v693_v18 = vmul.f32 %v690_v17, %v637_v52 }
 0xfbc   :  { %v696_v16 = vpop.permute.xlu0 %695 }
 0xfbd   :  { %v698_v61 = vmul.f32 %v696_v16, %v690_v17 }
 0xfbf   :  { %700 = vrot.lane.b32.xlu1 %v698_v61, %s1020_s3 }
0x1031   :  { %v701_v19 = vpop.permute.xlu1 %700 }
0x1032   :  { %v1267_v20 = vadd.f32 %v701_v19, %v693_v18 }
0x1034   :  { %1008 = vtanh.f32 %v1267_v20 }
0x103a   :  { %v1009_v21 = vpop.eup %1008 }
0x103b   :  { %706 = vrot.lane.b32.xlu2 %v1009_v21, %s1021_s4 }
0x1095   :  { %v707_v22 = vpop.permute.xlu2 %706 }
0x1096   :  { %v709_v23 = vmul.f32 %v707_v22, %v690_v17 }
0x1098   :  { %v718_v24 = vpack.c.bf16 %v709_v23, %v709_v23 }
0x109a   :  { %720 = vrot.lane.b32.xlu0 %v718_v24, %s1020_s3 }
0x10a2   :  { %316 = vrot.lane.b32.xlu0 %v1204_v29, %s1020_s3  ;;  %v797_v29 = vld [vmem:[%s1379_s6] sm:$0xff] }
0x10a3   :  { %844 = vmatpush.msrb.mxu1 %v797_v29 }
0x10aa   :  { %447 = vrot.lane.b32.xlu0 %v1230_v33, %s1020_s3 }
0x10b2   :  { %645 = vrot.lane.b32.xlu0 %v643_v55, %s1020_s3 }
0x110c   :  { %v721_v33 = vpop.permute.xlu0 %720 }
0x110d   :  { %925 = vmatmul.msk.bf16.vlgmr.msra.gmra.mxu3 %vm172_vm9, %v721_v33 }
0x1114   :  { %v317_v30 = vpop.permute.xlu0 %316 }
0x1115   :  { %319 = vst.msk [vmem:[#allocation3] sm:$0xff] %vm172_vm9, %v317_v30 }
0x111c   :  { %v448_v31 = vpop.permute.xlu0 %447  ;;  %v789_v34 = vld [vmem:[#allocation3] sm:$0xff] }
0x111d   :  { %451 = vst.msk [vmem:[#allocation3 + $0x10] sm:$0xff] %vm172_vm9, %v448_v31  ;;  %928 = vmatmul.msk.f32.vlgmr.msrb.gmra.mxu1 %vm172_vm9, %v789_v34 }
0x1124   :  { %v646_v35 = vpop.permute.xlu0 %645  ;;  %v791_v58 = vld [vmem:[#allocation3 + $0x10] sm:$0xff] }
0x1125   :  { %649 = vst.msk [vmem:[#allocation3 + $0x28] sm:$0xff] %vm172_vm9, %v646_v35 }
0x112c   :  { %v794_v15 = vld [vmem:[#allocation3 + $0x28] sm:$0xff] }
0x1190   :  { %v734_v37 = vpop.f32.mrf.mxu3 }
0x1191   :  { %v738_v38 = vadd.f32 %v734_v37, %v236_v36 }
0x1193   :  { %1010 = vtanh.f32 %v738_v38  ;;  %v926_v57 = vmul.f32 -1.442695, %v738_v38 }
0x1195   :  { %1012 = vpow2.f32 %v926_v57 }
0x1198   :  { %v736_v40 = vpop.f32.mrf.mxu3 }
0x1199   :  { %v1011_v41 = vpop.eup %1010 }
0x119a   :  { %v846_v43 = vpop.f32.mrf.mxu1  ;;  %761 = vrot.lane.b32.xlu1 %v1011_v41, %s1021_s4 }
0x119b   :  { %v847_v44 = vadd.f32 %v1299_v39, %v846_v43  ;;  %v1013_v32 = vpop.eup %1012 }
0x119c   :  { %v742_v45 = vadd.f32 1.0, %v1013_v32 }
0x119d   :  { %870 = vst.msk [vmem:[%s1381_s8] sm:$0xff] %vm98_vm0, %v847_v44 }
0x119e   :  { %1014 = vrcp.f32 %v742_v45  ;;  %v754_v49 = vand.u32 2147483648, %v742_v45  ;;  %vm748_vm11 = vweird.f32 %v742_v45  ;;  %v752_v59 = vand.u32 2147483647, %v742_v45 }
0x11a0   :  { %v755_v50 = vor.u32 1.1754944e-38, %v754_v49  ;;  %vm753_vm13 = vcmp.eq.f32.partialorder %v752_v59, 8.507059e+37 }
0x11a2   :  { %381 = vrot.lane.b32.xlu1 %v1218_v1, %s1020_s3 }
0x11a4   :  { %v1015_v47 = vpop.eup %1014 }
0x11a5   :  { %v744_v48 = vmul.f32 %v1015_v47, %v742_v45  ;;  %vm749_vm10 = vweird.f32 %v1015_v47 }
0x11a6   :  { %vm750_vm12 = vmor %vm748_vm11, %vm749_vm10 }
0x11a7   :  { %v745_v63 = vsub.f32 1.0, %v744_v48 }
0x11a9   :  { %v746_v42 = vmul.f32 %v1015_v47, %v745_v63 }
0x11aa   :  { %513 = vrot.lane.b32.xlu1 %v1242_v62, %s1020_s3 }
0x11ab   :  { %v747_v46 = vadd.f32 %v1015_v47, %v746_v42 }
0x11ad   :  { %v751_v1 = vsel %vm750_vm12, %v1015_v47, %v747_v46 }
0x11ae   :  { %v756_v51 = vsel %vm753_vm13, %v755_v50, %v751_v1 }
0x11af   :  { %v759_v0 = vmul.f32 %v756_v51, %v1267_v20 }
0x11b2   :  { %711 = vrot.lane.b32.xlu1 %v709_v23, %s1020_s3 }
0x120c   :  { %v762_v62 = vpop.permute.xlu1 %761 }
0x120d   :  { %v764_v52 = vmul.f32 %v762_v62, %v756_v51 }
0x120f   :  { %766 = vrot.lane.b32.xlu2 %v764_v52, %s1020_s3 }
0x1214   :  { %v382_v53 = vpop.permute.xlu1 %381 }
0x1215   :  { %385 = vst.msk [vmem:[#allocation3 + $0x8] sm:$0xff] %vm172_vm9, %v382_v53 }
0x121c   :  { %v514_v54 = vpop.permute.xlu1 %513  ;;  %v790_v55 = vld [vmem:[#allocation3 + $0x8] sm:$0xff] }
0x121d   :  { %517 = vst.msk [vmem:[#allocation3 + $0x18] sm:$0xff] %vm172_vm9, %v514_v54  ;;  %929 = vmatmul.msk.f32.gmra.mxu1 %vm172_vm9, %v790_v55 }
0x1224   :  { %v712_v56 = vpop.permute.xlu1 %711  ;;  %v792_v60 = vld [vmem:[#allocation3 + $0x18] sm:$0xff] }
0x1225   :  { %715 = vst.msk [vmem:[#allocation3 + $0x30] sm:$0xff] %vm172_vm9, %v712_v56  ;;  %930 = vmatmul.msk.f32.gmra.mxu1 %vm172_vm9, %v791_v58 }
0x122c   :  { %v795_v16 = vld [vmem:[#allocation3 + $0x30] sm:$0xff] }
0x122d   :  { %931 = vmatmul.msk.f32.gmra.mxu1 %vm172_vm9, %v792_v60 }
0x1269   :  { %v767_v2 = vpop.permute.xlu2 %766 }
0x126a   :  { %v769_v3 = vadd.f32 %v767_v2, %v759_v0 }
0x126c   :  { %1016 = vtanh.f32 %v769_v3  ;;  %784 = vrot.lane.b32.xlu0 %v769_v3, %s1022_s7 }
0x1272   :  { %v1017_v5 = vpop.eup %1016 }
0x1273   :  { %772 = vrot.lane.b32.xlu2 %v1017_v5, %s1021_s4 }
0x127b   :  { %579 = vrot.lane.b32.xlu2 %v1252_v27, %s1020_s3 }
0x129a   :  { %v849_v6 = vpop.f32.mrf.mxu1 }
0x129b   :  { %v850_v7 = vadd.f32 %v1299_v39, %v849_v6 }
0x129d   :  { %871 = vst.msk [vmem:[%s1381_s8 + $0x8] sm:$0xff] %vm98_vm0, %v850_v7 }
0x12a2   :  { %v852_v8 = vpop.f32.mrf.mxu1 }
0x12a3   :  { %v853_v9 = vadd.f32 %v1299_v39, %v852_v8 }
0x12a5   :  { %872 = vst.msk [vmem:[%s1381_s8 + $0x10] sm:$0xff] %vm98_vm0, %v853_v9 }
0x12aa   :  { %v855_v10 = vpop.f32.mrf.mxu1 }
0x12ab   :  { %v856_v11 = vadd.f32 %v1299_v39, %v855_v10 }
0x12ad   :  { %873 = vst.msk [vmem:[%s1381_s8 + $0x18] sm:$0xff] %vm98_vm0, %v856_v11 }
0x12cd   :  { %v773_v27 = vpop.permute.xlu2 %772 }
0x12ce   :  { %v775_v12 = vmul.f32 %v773_v27, %v756_v51 }
0x12d0   :  { %777 = vrot.lane.b32.xlu2 %v775_v12, %s1020_s3 }
0x12d5   :  { %v580_v13 = vpop.permute.xlu2 %579 }
0x12d6   :  { %583 = vst.msk [vmem:[#allocation3 + $0x20] sm:$0xff] %vm172_vm9, %v580_v13 }
0x12dd   :  { %v793_v14 = vld [vmem:[#allocation3 + $0x20] sm:$0xff] }
0x12de   :  { %v785_v4 = vpop.permute.xlu0 %784  ;;  %932 = vmatmul.msk.f32.gmra.mxu1 %vm172_vm9, %v793_v14 }
0x12df   :  { %927 = vst.msk [vmem:[%s1382_s9 + $0x8] sm:$0xff] %vm172_vm9, %v785_v4 }
0x12e6   :  { %933 = vmatmul.msk.f32.gmra.mxu1 %vm172_vm9, %v794_v15 }
0x12ee   :  { %934 = vmatmul.msk.f32.gmra.mxu1 %vm172_vm9, %v795_v16 }
0x132a   :  { %v778_v17 = vpop.permute.xlu2 %777 }
0x132b   :  { %781 = vst.msk [vmem:[#allocation3 + $0x38] sm:$0xff] %vm172_vm9, %v778_v17 }
0x132c   :  { %782 = vst.msk [vmem:[%s1382_s9] sm:$0xff] %vm172_vm9, %v778_v17 }
0x1332   :  { %v796_v61 = vld [vmem:[#allocation3 + $0x38] sm:$0xff] }
0x1333   :  { %935 = vmatmul.msk.f32.gmra.mxu1 %vm172_vm9, %v796_v61 }
0x135b   :  { %v858_v18 = vpop.f32.mrf.mxu1 }
0x135c   :  { %v859_v19 = vadd.f32 %v1299_v39, %v858_v18 }
0x135e   :  { %874 = vst.msk [vmem:[%s1381_s8 + $0x20] sm:$0xff] %vm98_vm0, %v859_v19 }
0x1363   :  { %v861_v20 = vpop.f32.mrf.mxu1 }
0x1364   :  { %v862_v21 = vadd.f32 %v1299_v39, %v861_v20 }
0x1366   :  { %875 = vst.msk [vmem:[%s1381_s8 + $0x28] sm:$0xff] %vm98_vm0, %v862_v21 }
0x136b   :  { %v864_v22 = vpop.f32.mrf.mxu1 }
0x136c   :  { %v865_v23 = vadd.f32 %v1299_v39, %v864_v22 }
0x136e   :  { %876 = vst.msk [vmem:[%s1381_s8 + $0x30] sm:$0xff] %vm98_vm0, %v865_v23 }
0x13b0   :  { %v867_v24 = vpop.f32.mrf.mxu1 }
0x13b1   :  { %v868_v25 = vadd.f32 %v1299_v39, %v867_v24 }
0x13b3   :  { %877 = vst.msk [vmem:[%s1381_s8 + $0x38] sm:$0xff] %vm98_vm0, %v868_v25 }

</bundles_post_ra>
